<compile_context>
chip_gen: v6e
topology: v6e:2x2x1
jax: 0.10.0
libtpu: 0.0.40
codegen_flags: <defaults>
</compile_context>

<pallas_src>
from typing import NamedTuple

import jax
import jax.numpy as jnp
from jax.experimental import pallas as pl
from jax.experimental.pallas import tpu as pltpu


def _round_up(x: int, m: int) -> int:
    return ((x + m - 1) // m) * m


def _device_defaults():
    """(tm, ti, vmem_limit_bytes) per TPU generation."""
    kind = ""
    try:
        kind = jax.devices()[0].device_kind.lower()
    except Exception:
        pass
    if "v5 lite" in kind or "v5e" in kind or "v5lite" in kind:
        return 256, 512, 64 << 20          # v5e: already MXU-bound at tm=256
    if "v7" in kind or "tpu7" in kind or "7x" in kind:
        return 640, 256, 54 << 20           # v7x: 64 MiB physical VMEM -> leave headroom
    if "v6" in kind:
        return 768, 256, 100 << 20          # v6e: 128 MiB physical VMEM
    return 512, 256, 56 << 20                # safe default


def _spec(shape, index_map, buffers=None):
    """BlockSpec helper; optionally request a specific pipeline buffer count."""
    if buffers is None:
        return pl.BlockSpec(shape, index_map)
    try:
        return pl.BlockSpec(shape, index_map, pipeline_mode=pl.Buffered(buffers))
    except TypeError:  # older BlockSpec signature without pipeline_mode
        return pl.BlockSpec(shape, index_map)


class PreparedFFNWeights(NamedTuple):
    w_gate: jax.Array      # (H, I_pad) bf16
    w_up: jax.Array        # (H, I_pad) bf16
    w_down: jax.Array      # (I_pad, H) bf16
    intermediate: int      # original I
    ti: int                # I-tile size used for padding


def prepare_ffn_weights(w_gate, w_up, w_down, *, ti=None, dtype=jnp.bfloat16):
    """One-time weight preparation (cast + pad).  Call at init, NOT per forward."""
    H, I = w_gate.shape
    assert w_up.shape == (H, I) and w_down.shape == (I, H)
    if ti is None:
        _, ti, _ = _device_defaults()
    ti = _round_up(I, 128) if ti >= I else _round_up(ti, 128)   # keep lanes 128-aligned
    I_pad = _round_up(I, ti)
    wg = w_gate.astype(dtype)
    wu = w_up.astype(dtype)
    wd = w_down.astype(dtype)
    if I_pad != I:  # zero-padded gate/up cols -> silu(0)*0 = 0; matching down rows are 0
        wg = jnp.pad(wg, ((0, 0), (0, I_pad - I)))
        wu = jnp.pad(wu, ((0, 0), (0, I_pad - I)))
        wd = jnp.pad(wd, ((0, I_pad - I), (0, 0)))
    return PreparedFFNWeights(wg, wu, wd, I, ti)


def _ffn_kernel(x_ref, wg_ref, wu_ref, wd_ref, o_ref, acc_ref):
    """One (split, token-tile, I-tile) grid step of the gated MLP.

    x_ref  : (tm, H)   bf16 activation tile (single-buffered; constant over j)
    wg_ref : (H, ti)   bf16 gate-proj weight block
    wu_ref : (H, ti)   bf16 up-proj weight block
    wd_ref : (ti, H)   bf16 down-proj weight block
    o_ref  : (tm, H)   output tile (written only on the last I-tile)
    acc_ref: (tm, H)   f32 down-proj accumulator (VMEM scratch)
    """
    j = pl.program_id(2)
    nj = pl.num_programs(2)

    @pl.when(j == 0)
    def _init():
        acc_ref[...] = jnp.zeros_like(acc_ref)

    x = x_ref[...]
    g = jnp.dot(x, wg_ref[...], preferred_element_type=jnp.float32)   # (tm, ti)
    u = jnp.dot(x, wu_ref[...], preferred_element_type=jnp.float32)   # (tm, ti)
    h = (g * jax.nn.sigmoid(g)) * u                                   # SiLU*up in f32
    partial = jnp.dot(h.astype(wd_ref.dtype), wd_ref[...],
                      preferred_element_type=jnp.float32)             # (tm, H)

    @pl.when(j < nj - 1)
    def _accumulate():
        acc_ref[...] += partial

    @pl.when(j == nj - 1)
    def _finalize():  # fuse last partial into the output write (no acc re-store/re-load)
        o_ref[...] = (acc_ref[...] + partial).astype(o_ref.dtype)


def feed_forward_prepared(hidden_states, prepared: PreparedFFNWeights, *,
                          tm=None, vmem_limit_bytes=None, split_decode=True):
    """Gated feed-forward on pre-packed weights.  hidden_states: (B, S, H) -> (B, S, H)."""
    wg, wu, wd, I, ti = prepared
    B, S, H = hidden_states.shape
    assert wg.shape[0] == H
    I_pad = wg.shape[1]
    nI = I_pad // ti
    M = B * S

    tm_d, _, vmem_d = _device_defaults()
    if tm is None:
        tm = tm_d
    if vmem_limit_bytes is None:
        vmem_limit_bytes = vmem_d

    # ---- token tiling ((8, 128)-compliant, clamped to the problem) ----
    tm = max(8, min(tm, _round_up(M, 8)))
    tm = _round_up(tm, 8)
    M_pad = _round_up(M, tm)
    n_tok = M_pad // tm

    # Decode-shaped calls (one token tile): split the reduction axis 2 ways so a
    # second TensorCore (v7x) also streams weights; partials are summed in XLA.
    n_split = 2 if (split_decode and n_tok == 1 and nI >= 2 and nI % 2 == 0) else 1
    nI_per = nI // n_split

    out_dtype = hidden_states.dtype
    kernel_out_dtype = jnp.float32 if n_split > 1 else out_dtype

    # ---- activations: flatten, zero-pad ragged rows, cast to MXU operand dtype ----
    x2d = hidden_states.reshape(M, H)
    if M_pad != M:
        x2d = jnp.pad(x2d, ((0, M_pad - M), (0, 0)))
    x2d = x2d.astype(wg.dtype)

    wbytes = jnp.dtype(wg.dtype).itemsize
    cost = pl.CostEstimate(
        flops=6 * M_pad * I_pad * H,
        transcendentals=M_pad * I_pad,
        bytes_accessed=(n_tok * 3 * H * I_pad * wbytes
                        + M_pad * H * (x2d.dtype.itemsize
                                       + n_split * jnp.dtype(kernel_out_dtype).itemsize)),
    )

    out2d = pl.pallas_call(
        _ffn_kernel,
        out_shape=jax.ShapeDtypeStruct((n_split * M_pad, H), kernel_out_dtype),
        grid_spec=pltpu.PrefetchScalarGridSpec(
            num_scalar_prefetch=0,
            grid=(n_split, n_tok, nI_per),                # (split, tokens, reduction)
            in_specs=[
                _spec((tm, H), lambda s, i, j: (i, 0), buffers=1),           # activations
                pl.BlockSpec((H, ti), lambda s, i, j: (0, s * nI_per + j)),  # gate weights
                pl.BlockSpec((H, ti), lambda s, i, j: (0, s * nI_per + j)),  # up weights
                pl.BlockSpec((ti, H), lambda s, i, j: (s * nI_per + j, 0)),  # down weights
            ],
            out_specs=_spec((tm, H), lambda s, i, j: (s * n_tok + i, 0), buffers=1),
            scratch_shapes=[pltpu.VMEM((tm, H), jnp.float32)],               # accumulator
        ),
        compiler_params=pltpu.CompilerParams(
            dimension_semantics=("parallel", "parallel", "arbitrary"),
            vmem_limit_bytes=vmem_limit_bytes,
        ),
        cost_estimate=cost,
    )(x2d, wg, wu, wd)

    if n_split > 1:
        out2d = out2d.reshape(n_split, M_pad, H).sum(axis=0)
    return out2d[:M].astype(out_dtype).reshape(B, S, H)


def feed_forward(hidden_states, w_gate, w_up, w_down, *, ti=None, **kwargs):
    """Convenience path: prepares weights on the fly (prefer prepare_ffn_weights once)."""
    prepared = prepare_ffn_weights(w_gate, w_up, w_down, ti=ti)
    return feed_forward_prepared(hidden_states, prepared, **kwargs)


def feed_forward_ref(hidden_states, w_gate, w_up, w_down):
    """Pure-JAX reference with the same bf16-operand / f32-accumulate precision."""
    x = hidden_states.astype(jnp.bfloat16)
    g = jnp.dot(x, w_gate.astype(jnp.bfloat16), preferred_element_type=jnp.float32)
    u = jnp.dot(x, w_up.astype(jnp.bfloat16), preferred_element_type=jnp.float32)
    h = (g * jax.nn.sigmoid(g)) * u
    y = jnp.dot(h.astype(jnp.bfloat16), w_down.astype(jnp.bfloat16),
                preferred_element_type=jnp.float32)
    return y.astype(hidden_states.dtype)


if __name__ == "__main__":
    key = jax.random.PRNGKey(0)

    # --- Test 1: small shapes, convenience path (single I-tile) ---
    B, S, H, I = 2, 8, 32, 64
    kx, kg, ku, kd = jax.random.split(key, 4)
    x = jax.random.normal(kx, (B, S, H), dtype=jnp.float32)
    w_gate = jax.random.normal(kg, (H, I), dtype=jnp.float32) * 0.05
    w_up = jax.random.normal(ku, (H, I), dtype=jnp.float32) * 0.05
    w_down = jax.random.normal(kd, (I, H), dtype=jnp.float32) * 0.05

    out = jax.block_until_ready(feed_forward(x, w_gate, w_up, w_down))
    ref = feed_forward_ref(x, w_gate, w_up, w_down)
    assert out.shape == (B, S, H)
    assert jnp.allclose(out, ref, atol=2e-3, rtol=2e-2), (
        float(jnp.max(jnp.abs(out - ref))))

    # --- Test 2: pre-packed weights, multi-I-tile streaming + decode 2-way split ---
    H2, I2 = 32, 512
    k0, k1, k2, k3 = jax.random.split(jax.random.PRNGKey(1), 4)
    x2 = jax.random.normal(k0, (1, 8, H2), dtype=jnp.float32)
    wg2 = jax.random.normal(k1, (H2, I2), dtype=jnp.float32) * 0.05
    wu2 = jax.random.normal(k2, (H2, I2), dtype=jnp.float32) * 0.05
    wd2 = jax.random.normal(k3, (I2, H2), dtype=jnp.float32) * 0.05

    prepared2 = prepare_ffn_weights(wg2, wu2, wd2, ti=128)   # hoisted out of hot path
    out2 = jax.block_until_ready(feed_forward_prepared(x2, prepared2))
    ref2 = feed_forward_ref(x2, wg2, wu2, wd2)
    assert out2.shape == (1, 8, H2)
    assert jnp.allclose(out2, ref2, atol=2e-3, rtol=2e-2), (
        float(jnp.max(jnp.abs(out2 - ref2))))

    # TODO(synk): the PyTorch wrapper also threads `input_args` (LoRA adapter routing)
    # through VLMFeedForward; only the base (non-LoRA) gated-MLP path is implemented.
    print("KERNEL_OK")
</pallas_src>

<mosaic_0001>
module attributes {stable_mosaic.version = 11 : i64} {
  func.func @_ffn_kernel(%arg0: i32, %arg1: i32, %arg2: i32, %arg3: memref<16x32xbf16, #tpu.memory_space<vmem>>, %arg4: memref<32x128xbf16, #tpu.memory_space<vmem>>, %arg5: memref<32x128xbf16, #tpu.memory_space<vmem>>, %arg6: memref<128x32xbf16, #tpu.memory_space<vmem>>, %arg7: memref<16x32xf32, #tpu.memory_space<vmem>>, %arg8: memref<16x32xf32, #tpu.memory_space<vmem>>) attributes {dimension_semantics = [#tpu.dimension_semantics<parallel>, #tpu.dimension_semantics<parallel>, #tpu.dimension_semantics<arbitrary>], iteration_bounds = array<i64: 1, 1, 1>, scalar_prefetch = 0 : i64, scratch_operands = 1 : i64, tpu.core_type = #tpu.core_type<tc>, window_params = [{pipeline_mode = #tpu.pipeline_mode<synchronous>, transform_indices = @transform_0, window_bounds = array<i64: 16, 32>}, {transform_indices = @transform_1, window_bounds = array<i64: 32, 128>}, {transform_indices = @transform_2, window_bounds = array<i64: 32, 128>}, {transform_indices = @transform_3, window_bounds = array<i64: 128, 32>}, {pipeline_mode = #tpu.pipeline_mode<synchronous>, transform_indices = @transform_4, window_bounds = array<i64: 16, 32>}]} {
    %c0_i32 = arith.constant 0 : i32
    %0 = arith.cmpi eq, %arg2, %c0_i32 : i32
    %1 = arith.extui %0 : i1 to i32
    %c0_i32_0 = arith.constant 0 : i32
    %2 = arith.cmpi ne, %1, %c0_i32_0 : i32
    scf.if %2 {
      %cst_15 = arith.constant 0.000000e+00 : f32
      %24 = vector.broadcast %cst_15 : f32 to vector<16x32xf32>
      %c0_16 = arith.constant 0 : index
      %c0_17 = arith.constant 0 : index
      %25 = vector.load %arg8[%c0_16, %c0_17] : memref<16x32xf32, #tpu.memory_space<vmem>>, vector<16x32xf32>
      tpu.vector_store %arg8[%c0_16, %c0_17], %24 {strides = array<i32>} : memref<16x32xf32, #tpu.memory_space<vmem>>, vector<16x32xf32>,
    } else {
    }
    %c0 = arith.constant 0 : index
    %c0_1 = arith.constant 0 : index
    %3 = vector.load %arg3[%c0, %c0_1] : memref<16x32xbf16, #tpu.memory_space<vmem>>, vector<16x32xbf16>
    %c0_2 = arith.constant 0 : index
    %c0_3 = arith.constant 0 : index
    %4 = vector.load %arg4[%c0_2, %c0_3] : memref<32x128xbf16, #tpu.memory_space<vmem>>, vector<32x128xbf16>
    %cst = arith.constant dense<0.000000e+00> : vector<16x128xf32>
    %5 = tpu.matmul %3, %4, %cst {dimension_numbers = #tpu.dot_dimension_numbers<[1], [0], [0], [1], [0, 0, 1, 1], [], []>} : vector<16x32xbf16>, vector<32x128xbf16>, vector<16x128xf32> -> vector<16x128xf32>
    %c0_4 = arith.constant 0 : index
    %c0_5 = arith.constant 0 : index
    %6 = vector.load %arg5[%c0_4, %c0_5] : memref<32x128xbf16, #tpu.memory_space<vmem>>, vector<32x128xbf16>
    %cst_6 = arith.constant dense<0.000000e+00> : vector<16x128xf32>
    %7 = tpu.matmul %3, %6, %cst_6 {dimension_numbers = #tpu.dot_dimension_numbers<[1], [0], [0], [1], [0, 0, 1, 1], [], []>} : vector<16x32xbf16>, vector<32x128xbf16>, vector<16x128xf32> -> vector<16x128xf32>
    %8 = arith.negf %5 : vector<16x128xf32>
    %9 = math.exp %8 : vector<16x128xf32>
    %cst_7 = arith.constant 1.000000e+00 : f32
    %10 = vector.broadcast %cst_7 : f32 to vector<16x128xf32>
    %11 = arith.addf %10, %9 : vector<16x128xf32>
    %12 = arith.divf %10, %11 : vector<16x128xf32>
    %13 = arith.mulf %5, %12 : vector<16x128xf32>
    %14 = arith.mulf %13, %7 : vector<16x128xf32>
    %15 = arith.truncf %14 : vector<16x128xf32> to vector<16x128xbf16>
    %c0_8 = arith.constant 0 : index
    %c0_9 = arith.constant 0 : index
    %16 = vector.load %arg6[%c0_8, %c0_9] : memref<128x32xbf16, #tpu.memory_space<vmem>>, vector<128x32xbf16>
    %cst_10 = arith.constant dense<0.000000e+00> : vector<16x32xf32>
    %17 = tpu.matmul %15, %16, %cst_10 {dimension_numbers = #tpu.dot_dimension_numbers<[1], [0], [0], [1], [0, 0, 1, 1], [], []>} : vector<16x128xbf16>, vector<128x32xbf16>, vector<16x32xf32> -> vector<16x32xf32>
    %c0_i32_11 = arith.constant 0 : i32
    %18 = arith.cmpi slt, %arg2, %c0_i32_11 : i32
    %19 = arith.extui %18 : i1 to i32
    %c0_i32_12 = arith.constant 0 : i32
    %20 = arith.cmpi ne, %19, %c0_i32_12 : i32
    scf.if %20 {
      %c0_15 = arith.constant 0 : index
      %c0_16 = arith.constant 0 : index
      %24 = vector.load %arg8[%c0_15, %c0_16] : memref<16x32xf32, #tpu.memory_space<vmem>>, vector<16x32xf32>
      %25 = arith.addf %24, %17 : vector<16x32xf32>
      %c0_17 = arith.constant 0 : index
      %c0_18 = arith.constant 0 : index
      %26 = vector.load %arg8[%c0_17, %c0_18] : memref<16x32xf32, #tpu.memory_space<vmem>>, vector<16x32xf32>
      tpu.vector_store %arg8[%c0_17, %c0_18], %25 {strides = array<i32>} : memref<16x32xf32, #tpu.memory_space<vmem>>, vector<16x32xf32>,
    } else {
    }
    %c0_i32_13 = arith.constant 0 : i32
    %21 = arith.cmpi eq, %arg2, %c0_i32_13 : i32
    %22 = arith.extui %21 : i1 to i32
    %c0_i32_14 = arith.constant 0 : i32
    %23 = arith.cmpi ne, %22, %c0_i32_14 : i32
    scf.if %23 {
      %c0_15 = arith.constant 0 : index
      %c0_16 = arith.constant 0 : index
      %24 = vector.load %arg8[%c0_15, %c0_16] : memref<16x32xf32, #tpu.memory_space<vmem>>, vector<16x32xf32>
      %25 = arith.addf %24, %17 : vector<16x32xf32>
      %c0_17 = arith.constant 0 : index
      %c0_18 = arith.constant 0 : index
      %26 = vector.load %arg7[%c0_17, %c0_18] : memref<16x32xf32, #tpu.memory_space<vmem>>, vector<16x32xf32>
      tpu.vector_store %arg7[%c0_17, %c0_18], %25 {strides = array<i32>} : memref<16x32xf32, #tpu.memory_space<vmem>>, vector<16x32xf32>,
    } else {
    }
    return
  }
  func.func @transform_0(%arg0: i32, %arg1: i32, %arg2: i32) -> (i32, i32) {
    %c0_i32 = arith.constant 0 : i32
    %c0_i32_0 = arith.constant 0 : i32
    return %arg1, %c0_i32 : i32, i32
  }
  func.func @transform_1(%arg0: i32, %arg1: i32, %arg2: i32) -> (i32, i32) {
    %c1_i32 = arith.constant 1 : i32
    %0 = arith.muli %arg0, %c1_i32 : i32
    %1 = arith.addi %0, %arg2 : i32
    %c0_i32 = arith.constant 0 : i32
    %c0_i32_0 = arith.constant 0 : i32
    return %c0_i32, %1 : i32, i32
  }
  func.func @transform_2(%arg0: i32, %arg1: i32, %arg2: i32) -> (i32, i32) {
    %c1_i32 = arith.constant 1 : i32
    %0 = arith.muli %arg0, %c1_i32 : i32
    %1 = arith.addi %0, %arg2 : i32
    %c0_i32 = arith.constant 0 : i32
    %c0_i32_0 = arith.constant 0 : i32
    return %c0_i32, %1 : i32, i32
  }
  func.func @transform_3(%arg0: i32, %arg1: i32, %arg2: i32) -> (i32, i32) {
    %c1_i32 = arith.constant 1 : i32
    %0 = arith.muli %arg0, %c1_i32 : i32
    %1 = arith.addi %0, %arg2 : i32
    %c0_i32 = arith.constant 0 : i32
    %c0_i32_0 = arith.constant 0 : i32
    return %1, %c0_i32 : i32, i32
  }
  func.func @transform_4(%arg0: i32, %arg1: i32, %arg2: i32) -> (i32, i32) {
    %c1_i32 = arith.constant 1 : i32
    %0 = arith.muli %arg0, %c1_i32 : i32
    %1 = arith.addi %0, %arg1 : i32
    %c0_i32 = arith.constant 0 : i32
    %c0_i32_0 = arith.constant 0 : i32
    return %1, %c0_i32 : i32, i32
  }
}

</mosaic_0001>

<bundles_post_ra>
// kernel: tpu_custom_call.1
= control target key start
LH: loop header
LB: loop body
LE: loop exit
PB: predicated region body
PF: predicated region fallthrough
CT: control target
= control target key end

     0   :  { %v504_v1 = vmov 0.0   ;;  %vm505_vm0 = vmmov 0   ;;  %vm81_vm1 = vcmask 261120   ;;  %s582_s0 = inlined_call_operand.vmem [shape: bf16[16,32], index: 0, kind: input, shape index: {}]   ;;  %s583_s1 = inlined_call_operand.vmem [shape: bf16[32,128], index: 1, kind: input, shape index: {}]   ;;  %s584_s2 = inlined_call_operand.vmem [shape: bf16[32,128], index: 2, kind: input, shape index: {}]   ;;  %s585_s3 = inlined_call_operand.vmem [shape: bf16[128,32], index: 3, kind: input, shape index: {}]   ;;  %s586_s4 = inlined_call_operand.hbm [shape: f32[16,32], index: 4, kind: output, shape index: {}]  }
   0x1   :  { %v461_v0 = vld [vmem:[%s583_s1 + $0x8] sm:$0xff]   ;;  %420 = vmatprep.subr.bf16.mxu1 %v504_v1  ;;  %436 = vmatprep.subr.bf16.mxu0 %v504_v1  ;;  %v462_v2 = vld [vmem:[%s583_s1] sm:$0xff]   ;;  %82 = vst.msk [vmem:[#allocation2] sm:$0xff] %vm81_vm1, %v504_v1  ;;  %83 = vst.msk [vmem:[#allocation2 + $0x8] sm:$0xff] %vm81_vm1, %v504_v1 }
   0x2   :  { %421 = vmatpush3.bf16.msra.mxu1 %v461_v0  ;;  %424 = vmatprep.mubr.msk.bf16.mxu1 %vm505_vm0, %v504_v1  ;;  %v463_v3 = vld [vmem:[%s582_s0] sm:$0xff]   ;;  %v464_v4 = vld [vmem:[%s584_s2 + $0x8] sm:$0xff]  }
   0x3   :  { %422 = vmatprep.subr.bf16.mxu1 %v504_v1  ;;  %452 = vmatprep.mubr.msk.bf16.mxu0 %vm505_vm0, %v504_v1  ;;  %v465_v5 = vld [vmem:[%s584_s2] sm:$0xff]  }
   0x6   :  { %423 = vmatpush3.bf16.msra.mxu1 %v462_v2 }
   0x7   :  { %428 = vmatprep.subr.bf16.mxu1 %v504_v1 }
   0x9   :  { %425 = vmatmul.mubr.msk.bf16.vlgmr.msra.gmra.mxu1 %vm81_vm1, %v463_v3 }
   0xa   :  { %429 = vmatpush3.bf16.msra.mxu1 %v464_v4  ;;  %432 = vmatprep.mubr.msk.bf16.mxu1 %vm505_vm0, %v504_v1 }
   0xb   :  { %9 = vsyncpa [#allocation4], 0  ;;  %430 = vmatprep.subr.bf16.mxu1 %v504_v1  ;;  %v466_v6 = vld [vmem:[%s585_s3 + $0x38] sm:$0xff]   ;;  %v467_v7 = vld [vmem:[%s585_s3 + $0x30] sm:$0xff]  }
   0xc   :  { %437 = vmatpush3.bf16.msra.mxu0 %v466_v6  ;;  %v468_v8 = vld [vmem:[%s585_s3 + $0x28] sm:$0xff]   ;;  %v469_v9 = vld [vmem:[%s585_s3 + $0x20] sm:$0xff]   ;;  %v470_v10 = vld [vmem:[%s585_s3 + $0x18] sm:$0xff]  }
   0xd   :  { %438 = vmatprep.subr.bf16.mxu0 %v504_v1  ;;  %v471_v11 = vld [vmem:[%s585_s3 + $0x10] sm:$0xff]   ;;  %v472_v12 = vld [vmem:[%s585_s3 + $0x8] sm:$0xff]   ;;  %v473_v13 = vld [vmem:[%s585_s3] sm:$0xff]   ;;  %s506_s3 = smov [#allocation3]  }
   0xe   :  { %431 = vmatpush3.bf16.msra.mxu1 %v465_v5  ;;  %v344_v35 = vld [vmem:[#allocation2] sm:$0xff]  ;;  %s359_s12 = sshll.u32 %s506_s3, 4  ;;  %v345_v39 = vld [vmem:[#allocation2 + $0x8] sm:$0xff]  ;;  %s360_s12 = int_to_ptr.vmem [resolvable:$true] %s359_s12 }
   0xf   :  { %s482_s13 = scalar_lea.vmem %s360_s12, 256  ;;  %p487_p1 = scmp.lt.s32.totalorder %s360_s12, %s360_s12 }
  0x10   :  { %439 = vmatpush3.bf16.msra.mxu0 %v467_v7  ;;  %p483_p0 = scmp.ne.s32.totalorder %s360_s12, %s482_s13  ;;  %p488_p2 = scmp.lt.s32.totalorder %s482_s13, %s482_s13 }
  0x11   :  { %433 = vmatmul.mubr.msk.bf16.vlgmr.msra.gmra.mxu1 %vm81_vm1, %v463_v3  ;;  %440 = vmatprep.subr.bf16.mxu0 %v504_v1 }
  0x12   :  { %p489_p3 = por %p488_p2, %p487_p1 }
  0x14   :  { %441 = vmatpush3.bf16.msra.mxu0 %v468_v8  ;;  %p490_p4 = pnand %p489_p3, %p483_p0 }
  0x15   :  { %442 = vmatprep.subr.bf16.mxu0 %v504_v1 }
  0x18   :  { %443 = vmatpush3.bf16.msra.mxu0 %v469_v9 }
  0x19   :  { %444 = vmatprep.subr.bf16.mxu0 %v504_v1 }
  0x1c   :  { %445 = vmatpush3.bf16.msra.mxu0 %v470_v10 }
  0x1d   :  { %446 = vmatprep.subr.bf16.mxu0 %v504_v1 }
  0x20   :  { %447 = vmatpush3.bf16.msra.mxu0 %v471_v11 }
  0x21   :  { %448 = vmatprep.subr.bf16.mxu0 %v504_v1 }
  0x24   :  { %449 = vmatpush3.bf16.msra.mxu0 %v472_v12 }
  0x25   :  { %450 = vmatprep.subr.bf16.mxu0 %v504_v1 }
  0x28   :  { %451 = vmatpush3.bf16.msra.mxu0 %v473_v13 }
  0xc9   :  { %v145_v14 = vpop.f32.mrf.mxu1 }
  0xca   :  { %v395_v15 = vmul.f32 -1.442695, %v145_v14 }
  0xcb   :  { %v426_v16 = vpop.f32.mrf.mxu1 }
  0xcc   :  { %474 = vpow2.f32 %v395_v15 }
  0xcd   :  { %v148_v17 = vpop.f32.mrf.mxu1 }
  0xce   :  { %v396_v18 = vmul.f32 -1.442695, %v148_v17 }
  0xcf   :  { %v427_v19 = vpop.f32.mrf.mxu1 }
  0xd0   :  { %476 = vpow2.f32 %v396_v18 }
  0xd1   :  { %v202_v20 = vpop.f32.mrf.mxu1 }
  0xd3   :  { %v434_v21 = vpop.f32.mrf.mxu1 }
  0xd5   :  { %v205_v22 = vpop.f32.mrf.mxu1 }
  0xd7   :  { %v435_v23 = vpop.f32.mrf.mxu1 }
  0xd9   :  { %v475_v24 = vpop.eup %474 }
  0xda   :  { %v215_v25 = vadd.f32 1.0, %v475_v24 }
  0xdc   :  { %478 = vrcp.f32 %v215_v25 }
  0xdd   :  { %v477_v26 = vpop.eup %476 }
  0xde   :  { %v216_v27 = vadd.f32 1.0, %v477_v26 }
  0xe0   :  { %480 = vrcp.f32 %v216_v27 }
  0xe9   :  { %v479_v28 = vpop.eup %478 }
  0xea   :  { %v221_v29 = vmul.f32 %v479_v28, %v145_v14 }
  0xec   :  { %v223_v32 = vmul.f32 %v221_v29, %v202_v20 }
  0xed   :  { %v481_v30 = vpop.eup %480 }
  0xee   :  { %v222_v31 = vmul.f32 %v481_v30, %v148_v17 }
  0xf0   :  { %v224_v33 = vmul.f32 %v222_v31, %v205_v22 }
  0xf2   :  { %v225_v34 = vpack.c.bf16 %v224_v33, %v223_v32 }
  0xf4   :  { %453 = vmatmul.mubr.bf16.vlgmr.msra.gmra.mxu0 %v225_v34 }
 0x1b4   :  { %v324_v36 = vpop.f32.mrf.mxu0 }
 0x1b5   :  { %v346_v37 = vadd.f32 %v344_v35, %v324_v36 }
 0x1b6   :  { %v454_v38 = vpop.f32.mrf.mxu0 }
 0x1b7   :  { %348 = vst.msk [vmem:[#allocation3] sm:$0xff] %vm81_vm1, %v346_v37 }
 0x1b8   :  { %v327_v40 = vpop.f32.mrf.mxu0 }
 0x1b9   :  { %v347_v41 = vadd.f32 %v345_v39, %v327_v40 }
 0x1ba   :  { %v455_v42 = vpop.f32.mrf.mxu0 }
 0x1bb   :  { %349 = vst.msk [vmem:[#allocation3 + $0x8] sm:$0xff] %vm81_vm1, %v347_v41 }
 0x1bc   :  { %493 = shalt.err (!%p490_p4)
}
 0x1bd   :  { %s507_s14 = smov 128   ;;  %s508_s15 = smov 8  }
 0x1be   :  { %365 = dma.vmem_to_hbm [thread:$0]  %s360_s12, 256, %s586_s4, [#allocation4], %s507_s14, %s507_s14, %s508_s15  }
 0x1bf   :  { %502 = dma.done.wait [#allocation4], 256  }
 0x1c0   :  { %503 = vsyncadd [#allocation4], 4294967040 }
 0x1c1   :  { %369 = vsyncpa [#allocation4], 1 }

</bundles_post_ra>
